<compile_context>
chip_gen: v5e
topology: v5e:2x2
jax: 0.10.0
libtpu: 0.0.40
codegen_flags: <defaults>
</compile_context>

<pallas_src>
import jax
import jax.numpy as jnp
import numpy as np
from jax import lax
from jax.experimental import pallas as pl
from jax.experimental.pallas import tpu as pltpu


def _pick_q_tile(nq, target):
    """Largest multiple of 8 <= target that divides nq; else the full nq."""
    if nq <= target:
        return nq
    t = (min(target, nq) // 8) * 8
    while t >= 8:
        if nq % t == 0:
            return t
        t -= 8
    return nq


def ufo_attention(queries, keys, values, params, *, h, d_k, d_v,
                  q_tile=512, compute_dtype=jnp.bfloat16):
    """UFOAttention forward. queries/keys/values: (b, n, d_model) float32.

    For production shapes prefer d_model / h*d_k / h*d_v multiples of 256
    (v6e/v7x MXU) and keep q_tile in the 256-1024 range; the defaults keep the
    blocks lane-dense and well inside the 40 MiB VMEM budget.
    """
    b_s, nq, d_model = queries.shape
    nk = keys.shape[1]
    cd = compute_dtype

    # Pad the output feature dim to a multiple of 128 lanes (unmasked stores).
    d_model_p = ((d_model + 127) // 128) * 128
    tq = _pick_q_tile(nq, q_tile)
    nqt = nq // tq

    # ---- wrapper-side operand prep (cheap XLA ops) -------------------------
    q_c = queries.astype(cd)
    k_c = keys.astype(cd)
    v_c = values.astype(cd)
    wq = params["wq"].astype(cd)                                   # (d_model, h*d_k)
    wk = params["wk"].astype(cd)                                   # (d_model, h*d_k)
    wv = params["wv"].astype(cd)                                   # (d_model, h*d_v)
    wo = jnp.zeros((h * d_v, d_model_p), cd).at[:, :d_model].set(
        params["wo"].astype(cd))                                   # padded columns
    bq = params["bq"].reshape(1, h * d_k).astype(jnp.float32)
    bk = params["bk"].reshape(1, h * d_k).astype(jnp.float32)
    bv = params["bv"].reshape(1, h * d_v).astype(jnp.float32)
    bo = jnp.zeros((1, d_model_p), jnp.float32).at[:, :d_model].set(
        params["bo"].reshape(1, d_model).astype(jnp.float32))
    gamma = params["gamma"].reshape(h).astype(jnp.float32)
    gsq = jnp.repeat(gamma * gamma, d_k).reshape(1, h * d_k)       # gamma^2 per column
    hid = jnp.arange(h * d_k, dtype=jnp.int32) // d_k
    seg = (hid[:, None] == hid[None, :]).astype(cd)                # block-diag ones

    # ---- kernel ------------------------------------------------------------
    def kernel(q_ref, k_ref, v_ref, wq_ref, wk_ref, wv_ref, wo_ref,
               bq_ref, bk_ref, bv_ref, bo_ref, gsq_ref, seg_ref,
               o_ref, wkv_ref):
        qt = pl.program_id(1)

        # Build the per-batch cached slab wkv = [XNorm(kv_h) @ Wo_h]_h once per
        # batch; the q-tile axis is innermost and sequential, so qt == 0 runs
        # first for every batch and the scratch carries across its q-tiles.
        @pl.when(qt == 0)
        def _build_kv_slab():
            kp = jnp.dot(k_ref[0], wk_ref[...],
                         preferred_element_type=jnp.float32) + bk_ref[...]
            vp = jnp.dot(v_ref[0], wv_ref[...],
                         preferred_element_type=jnp.float32) + bv_ref[...]
            for i in range(h):                                      # small static loop
                k_h = kp[:, i * d_k:(i + 1) * d_k].astype(cd)       # (nk, d_k)
                v_h = vp[:, i * d_v:(i + 1) * d_v].astype(cd)       # (nk, d_v)
                # kv_h = k_h^T @ v_h, contracting nk directly (no XLU transpose).
                kv = lax.dot_general(k_h, v_h, (((0,), (0,)), ((), ())),
                                     preferred_element_type=jnp.float32)
                # XNorm without gamma (gamma^2 is folded into q below).
                # TODO(synk): no epsilon, matching the PyTorch reference (an
                # all-zero kv row produces inf/NaN there too).
                kvn = kv * lax.rsqrt(jnp.sum(kv * kv, axis=-1, keepdims=True))
                wkv_ref[i * d_k:(i + 1) * d_k, :] = jnp.dot(
                    kvn.astype(cd), wo_ref[i * d_v:(i + 1) * d_v, :],
                    preferred_element_type=jnp.float32).astype(cd)

        # Packed Q projection for this q-tile.
        qp = jnp.dot(q_ref[0], wq_ref[...],
                     preferred_element_type=jnp.float32) + bq_ref[...]
        # Per-head ||q||^2, broadcast back to each head's columns, via a
        # block-diagonal ones matmul on the MXU (keeps the VPU/XLU free).
        seg_sum = jnp.dot((qp * qp).astype(cd), seg_ref[...],
                          preferred_element_type=jnp.float32)
        qn = (qp * gsq_ref[...] * lax.rsqrt(seg_sum)).astype(cd)
        # Fused (q_norm @ kv_norm @ Wo) against the cached slab, plus bias.
        out = jnp.dot(qn, wkv_ref[...],
                      preferred_element_type=jnp.float32) + bo_ref[...]
        o_ref[0] = out.astype(o_ref.dtype)

    grid_spec = pltpu.PrefetchScalarGridSpec(
        num_scalar_prefetch=0,
        grid=(b_s, nqt),
        in_specs=[
            pl.BlockSpec((1, tq, d_model), lambda b, t: (b, t, 0)),    # queries
            pl.BlockSpec((1, nk, d_model), lambda b, t: (b, 0, 0)),    # keys
            pl.BlockSpec((1, nk, d_model), lambda b, t: (b, 0, 0)),    # values
            pl.BlockSpec((d_model, h * d_k), lambda b, t: (0, 0)),     # wq
            pl.BlockSpec((d_model, h * d_k), lambda b, t: (0, 0)),     # wk
            pl.BlockSpec((d_model, h * d_v), lambda b, t: (0, 0)),     # wv
            pl.BlockSpec((h * d_v, d_model_p), lambda b, t: (0, 0)),   # wo (padded)
            pl.BlockSpec((1, h * d_k), lambda b, t: (0, 0)),           # bq
            pl.BlockSpec((1, h * d_k), lambda b, t: (0, 0)),           # bk
            pl.BlockSpec((1, h * d_v), lambda b, t: (0, 0)),           # bv
            pl.BlockSpec((1, d_model_p), lambda b, t: (0, 0)),         # bo (padded)
            pl.BlockSpec((1, h * d_k), lambda b, t: (0, 0)),           # gamma^2 cols
            pl.BlockSpec((h * d_k, h * d_k), lambda b, t: (0, 0)),     # seg-sum ones
        ],
        out_specs=pl.BlockSpec((1, tq, d_model_p), lambda b, t: (b, t, 0)),
        scratch_shapes=[pltpu.VMEM((h * d_k, d_model_p), cd)],
    )

    out_p = pl.pallas_call(
        kernel,
        out_shape=jax.ShapeDtypeStruct((b_s, nq, d_model_p), jnp.float32),
        grid_spec=grid_spec,
        compiler_params=pltpu.CompilerParams(
            dimension_semantics=("parallel", "arbitrary"),
            vmem_limit_bytes=40 * 1024 * 1024),
    )(q_c, k_c, v_c, wq, wk, wv, wo, bq, bk, bv, bo, gsq, seg)

    return out_p[:, :, :d_model]


def ufo_attention_ref(queries, keys, values, params, *, h, d_k, d_v):
    """Pure-JAX reference mirroring the PyTorch forward."""
    b_s, nq, d_model = queries.shape
    nk = keys.shape[1]
    q = (queries @ params["wq"] + params["bq"]).reshape(b_s, nq, h, d_k).transpose(0, 2, 1, 3)
    k = (keys @ params["wk"] + params["bk"]).reshape(b_s, nk, h, d_k).transpose(0, 2, 3, 1)
    v = (values @ params["wv"] + params["bv"]).reshape(b_s, nk, h, d_v).transpose(0, 2, 1, 3)
    kv = jnp.matmul(k, v)                                    # (b, h, d_k, d_v)
    gamma = params["gamma"].reshape(1, h, 1, 1)

    def xnorm(x):
        return x * gamma / jnp.linalg.norm(x, axis=-1, keepdims=True)

    out = jnp.matmul(xnorm(q), xnorm(kv))                    # (b, h, nq, d_v)
    out = out.transpose(0, 2, 1, 3).reshape(b_s, nq, h * d_v)
    return out @ params["wo"] + params["bo"]


def init_params(key, d_model, d_k, d_v, h):
    """Matches UFOAttention.init_weights: Linear W ~ N(0, 0.001), b = 0, gamma ~ N(0, 1)."""
    kq, kk, kv, ko, kg = jax.random.split(key, 5)
    std = 0.001
    return {
        "wq": jax.random.normal(kq, (d_model, h * d_k), jnp.float32) * std,
        "wk": jax.random.normal(kk, (d_model, h * d_k), jnp.float32) * std,
        "wv": jax.random.normal(kv, (d_model, h * d_v), jnp.float32) * std,
        "wo": jax.random.normal(ko, (h * d_v, d_model), jnp.float32) * std,
        "bq": jnp.zeros((h * d_k,), jnp.float32),
        "bk": jnp.zeros((h * d_k,), jnp.float32),
        "bv": jnp.zeros((h * d_v,), jnp.float32),
        "bo": jnp.zeros((d_model,), jnp.float32),
        "gamma": jax.random.normal(kg, (1, h, 1, 1), jnp.float32),
    }
    # NOTE: nn.Dropout is declared in __init__ but never applied in forward(),
    # so no dropout is implemented here.


def _check_case(key, *, b_s, nq, nk, d_model, d_k, d_v, h, q_tile):
    kp, kq, kk, kv = jax.random.split(key, 4)
    params = init_params(kp, d_model, d_k, d_v, h)
    queries = jax.random.normal(kq, (b_s, nq, d_model), jnp.float32)
    keys = jax.random.normal(kk, (b_s, nk, d_model), jnp.float32)
    values = jax.random.normal(kv, (b_s, nk, d_model), jnp.float32)

    ref = ufo_attention_ref(queries, keys, values, params, h=h, d_k=d_k, d_v=d_v)

    # Tight structural check with f32 matmuls.
    out_f32 = jax.block_until_ready(
        ufo_attention(queries, keys, values, params, h=h, d_k=d_k, d_v=d_v,
                      q_tile=q_tile, compute_dtype=jnp.float32))
    np.testing.assert_allclose(np.asarray(out_f32), np.asarray(ref),
                               rtol=2e-3, atol=2e-5)

    # bf16 MXU fast path (production configuration): looser tolerance.
    out_bf16 = jax.block_until_ready(
        ufo_attention(queries, keys, values, params, h=h, d_k=d_k, d_v=d_v,
                      q_tile=q_tile, compute_dtype=jnp.bfloat16))
    np.testing.assert_allclose(np.asarray(out_bf16), np.asarray(ref),
                               rtol=4e-2, atol=2e-4)


if __name__ == "__main__":
    key = jax.random.PRNGKey(0)
    k1, k2 = jax.random.split(key, 2)

    # Small single-tile case (matches the module's intended small example).
    _check_case(k1, b_s=2, nq=8, nk=8, d_model=32, d_k=16, d_v=16, h=4,
                q_tile=512)

    # Multi-q-tile case: exercises the cached kv-slab carry across q-tiles
    # (grid = (b, 2)) and the lane-padded output path.
    _check_case(k2, b_s=2, nq=32, nk=24, d_model=32, d_k=16, d_v=16, h=4,
                q_tile=16)

    print("KERNEL_OK")
</pallas_src>

<mosaic_0001>
module attributes {stable_mosaic.version = 11 : i64} {
  func.func @kernel(%arg0: i32, %arg1: i32, %arg2: memref<1x8x32xf32, #tpu.memory_space<vmem>>, %arg3: memref<1x8x32xf32, #tpu.memory_space<vmem>>, %arg4: memref<1x8x32xf32, #tpu.memory_space<vmem>>, %arg5: memref<32x64xf32, #tpu.memory_space<vmem>>, %arg6: memref<32x64xf32, #tpu.memory_space<vmem>>, %arg7: memref<32x64xf32, #tpu.memory_space<vmem>>, %arg8: memref<64x128xf32, #tpu.memory_space<vmem>>, %arg9: memref<1x64xf32, #tpu.memory_space<vmem>>, %arg10: memref<1x64xf32, #tpu.memory_space<vmem>>, %arg11: memref<1x64xf32, #tpu.memory_space<vmem>>, %arg12: memref<1x128xf32, #tpu.memory_space<vmem>>, %arg13: memref<1x64xf32, #tpu.memory_space<vmem>>, %arg14: memref<64x64xf32, #tpu.memory_space<vmem>>, %arg15: memref<1x8x128xf32, #tpu.memory_space<vmem>>, %arg16: memref<64x128xf32, #tpu.memory_space<vmem>>) attributes {dimension_semantics = [#tpu.dimension_semantics<parallel>, #tpu.dimension_semantics<arbitrary>], iteration_bounds = array<i64: 2, 1>, scalar_prefetch = 0 : i64, scratch_operands = 1 : i64, tpu.core_type = #tpu.core_type<tc>, window_params = [{transform_indices = @transform_0, window_bounds = array<i64: 1, 8, 32>}, {transform_indices = @transform_1, window_bounds = array<i64: 1, 8, 32>}, {transform_indices = @transform_2, window_bounds = array<i64: 1, 8, 32>}, {pipeline_mode = #tpu.pipeline_mode<synchronous>, transform_indices = @transform_3, window_bounds = array<i64: 32, 64>}, {pipeline_mode = #tpu.pipeline_mode<synchronous>, transform_indices = @transform_4, window_bounds = array<i64: 32, 64>}, {pipeline_mode = #tpu.pipeline_mode<synchronous>, transform_indices = @transform_5, window_bounds = array<i64: 32, 64>}, {pipeline_mode = #tpu.pipeline_mode<synchronous>, transform_indices = @transform_6, window_bounds = array<i64: 64, 128>}, {pipeline_mode = #tpu.pipeline_mode<synchronous>, transform_indices = @transform_7, window_bounds = array<i64: 1, 64>}, {pipeline_mode = #tpu.pipeline_mode<synchronous>, transform_indices = @transform_8, window_bounds = array<i64: 1, 64>}, {pipeline_mode = #tpu.pipeline_mode<synchronous>, transform_indices = @transform_9, window_bounds = array<i64: 1, 64>}, {pipeline_mode = #tpu.pipeline_mode<synchronous>, transform_indices = @transform_10, window_bounds = array<i64: 1, 128>}, {pipeline_mode = #tpu.pipeline_mode<synchronous>, transform_indices = @transform_11, window_bounds = array<i64: 1, 64>}, {pipeline_mode = #tpu.pipeline_mode<synchronous>, transform_indices = @transform_12, window_bounds = array<i64: 64, 64>}, {transform_indices = @transform_13, window_bounds = array<i64: 1, 8, 128>}]} {
    %c0_i32 = arith.constant 0 : i32
    %0 = arith.cmpi eq, %arg1, %c0_i32 : i32
    %1 = arith.extui %0 : i1 to i32
    %c0_i32_0 = arith.constant 0 : i32
    %2 = arith.cmpi ne, %1, %c0_i32_0 : i32
    scf.if %2 {
      %c0_20 = arith.constant 0 : index
      %c0_21 = arith.constant 0 : index
      %c0_22 = arith.constant 0 : index
      %26 = vector.load %arg3[%c0_20, %c0_21, %c0_22] : memref<1x8x32xf32, #tpu.memory_space<vmem>>, vector<1x8x32xf32>
      %27 = vector.shape_cast %26 : vector<1x8x32xf32> to vector<8x32xf32>
      %c0_23 = arith.constant 0 : index
      %c0_24 = arith.constant 0 : index
      %28 = vector.load %arg6[%c0_23, %c0_24] : memref<32x64xf32, #tpu.memory_space<vmem>>, vector<32x64xf32>
      %cst_25 = arith.constant dense<0.000000e+00> : vector<8x64xf32>
      %29 = tpu.matmul %27, %28, %cst_25 {dimension_numbers = #tpu.dot_dimension_numbers<[1], [0], [0], [1], [0, 0, 1, 1], [], []>} : vector<8x32xf32>, vector<32x64xf32>, vector<8x64xf32> -> vector<8x64xf32>
      %c0_26 = arith.constant 0 : index
      %c0_27 = arith.constant 0 : index
      %30 = vector.load %arg10[%c0_26, %c0_27] : memref<1x64xf32, #tpu.memory_space<vmem>>, vector<1x64xf32>
      %31 = vector.broadcast %30 : vector<1x64xf32> to vector<8x64xf32>
      %32 = arith.addf %29, %31 : vector<8x64xf32>
      %c0_28 = arith.constant 0 : index
      %c0_29 = arith.constant 0 : index
      %c0_30 = arith.constant 0 : index
      %33 = vector.load %arg4[%c0_28, %c0_29, %c0_30] : memref<1x8x32xf32, #tpu.memory_space<vmem>>, vector<1x8x32xf32>
      %34 = vector.shape_cast %33 : vector<1x8x32xf32> to vector<8x32xf32>
      %c0_31 = arith.constant 0 : index
      %c0_32 = arith.constant 0 : index
      %35 = vector.load %arg7[%c0_31, %c0_32] : memref<32x64xf32, #tpu.memory_space<vmem>>, vector<32x64xf32>
      %cst_33 = arith.constant dense<0.000000e+00> : vector<8x64xf32>
      %36 = tpu.matmul %34, %35, %cst_33 {dimension_numbers = #tpu.dot_dimension_numbers<[1], [0], [0], [1], [0, 0, 1, 1], [], []>} : vector<8x32xf32>, vector<32x64xf32>, vector<8x64xf32> -> vector<8x64xf32>
      %c0_34 = arith.constant 0 : index
      %c0_35 = arith.constant 0 : index
      %37 = vector.load %arg11[%c0_34, %c0_35] : memref<1x64xf32, #tpu.memory_space<vmem>>, vector<1x64xf32>
      %38 = vector.broadcast %37 : vector<1x64xf32> to vector<8x64xf32>
      %39 = arith.addf %36, %38 : vector<8x64xf32>
      %40 = vector.extract_strided_slice %32 {offsets = [0, 0], sizes = [8, 16], strides = [1, 1]} : vector<8x64xf32> to vector<8x16xf32>
      %41 = vector.extract_strided_slice %39 {offsets = [0, 0], sizes = [8, 16], strides = [1, 1]} : vector<8x64xf32> to vector<8x16xf32>
      %cst_36 = arith.constant dense<0.000000e+00> : vector<16x16xf32>
      %42 = tpu.matmul %40, %41, %cst_36 {dimension_numbers = #tpu.dot_dimension_numbers<[0], [0], [1], [1], [0, 1, 1, 1], [], []>} : vector<8x16xf32>, vector<8x16xf32>, vector<16x16xf32> -> vector<16x16xf32>
      %43 = arith.mulf %42, %42 : vector<16x16xf32>
      %cst_37 = arith.constant dense<0.000000e+00> : vector<16xf32>
      %44 = vector.multi_reduction <add>, %43, %cst_37 [1] : vector<16x16xf32> to vector<16xf32>
      %45 = vector.shape_cast %44 : vector<16xf32> to vector<16x1xf32>
      %46 = math.rsqrt %45 : vector<16x1xf32>
      %47 = vector.broadcast %46 : vector<16x1xf32> to vector<16x16xf32>
      %48 = arith.mulf %42, %47 : vector<16x16xf32>
      %c0_38 = arith.constant 0 : index
      %c0_39 = arith.constant 0 : index
      %49 = vector.load %arg8[%c0_38, %c0_39] : memref<64x128xf32, #tpu.memory_space<vmem>>, vector<16x128xf32>
      %cst_40 = arith.constant dense<0.000000e+00> : vector<16x128xf32>
      %50 = tpu.matmul %48, %49, %cst_40 {dimension_numbers = #tpu.dot_dimension_numbers<[1], [0], [0], [1], [0, 0, 1, 1], [], []>} : vector<16x16xf32>, vector<16x128xf32>, vector<16x128xf32> -> vector<16x128xf32>
      %c0_41 = arith.constant 0 : index
      %c0_42 = arith.constant 0 : index
      %51 = vector.load %arg16[%c0_41, %c0_42] : memref<64x128xf32, #tpu.memory_space<vmem>>, vector<16x128xf32>
      tpu.vector_store %arg16[%c0_41, %c0_42], %50 {strides = array<i32>} : memref<64x128xf32, #tpu.memory_space<vmem>>, vector<16x128xf32>,
      %52 = vector.extract_strided_slice %32 {offsets = [0, 16], sizes = [8, 16], strides = [1, 1]} : vector<8x64xf32> to vector<8x16xf32>
      %53 = vector.extract_strided_slice %39 {offsets = [0, 16], sizes = [8, 16], strides = [1, 1]} : vector<8x64xf32> to vector<8x16xf32>
      %cst_43 = arith.constant dense<0.000000e+00> : vector<16x16xf32>
      %54 = tpu.matmul %52, %53, %cst_43 {dimension_numbers = #tpu.dot_dimension_numbers<[0], [0], [1], [1], [0, 1, 1, 1], [], []>} : vector<8x16xf32>, vector<8x16xf32>, vector<16x16xf32> -> vector<16x16xf32>
      %55 = arith.mulf %54, %54 : vector<16x16xf32>
      %cst_44 = arith.constant dense<0.000000e+00> : vector<16xf32>
      %56 = vector.multi_reduction <add>, %55, %cst_44 [1] : vector<16x16xf32> to vector<16xf32>
      %57 = vector.shape_cast %56 : vector<16xf32> to vector<16x1xf32>
      %58 = math.rsqrt %57 : vector<16x1xf32>
      %59 = vector.broadcast %58 : vector<16x1xf32> to vector<16x16xf32>
      %60 = arith.mulf %54, %59 : vector<16x16xf32>
      %c16 = arith.constant 16 : index
      %c0_45 = arith.constant 0 : index
      %61 = vector.load %arg8[%c16, %c0_45] : memref<64x128xf32, #tpu.memory_space<vmem>>, vector<16x128xf32>
      %cst_46 = arith.constant dense<0.000000e+00> : vector<16x128xf32>
      %62 = tpu.matmul %60, %61, %cst_46 {dimension_numbers = #tpu.dot_dimension_numbers<[1], [0], [0], [1], [0, 0, 1, 1], [], []>} : vector<16x16xf32>, vector<16x128xf32>, vector<16x128xf32> -> vector<16x128xf32>
      %c16_47 = arith.constant 16 : index
      %c0_48 = arith.constant 0 : index
      %63 = vector.load %arg16[%c16_47, %c0_48] : memref<64x128xf32, #tpu.memory_space<vmem>>, vector<16x128xf32>
      tpu.vector_store %arg16[%c16_47, %c0_48], %62 {strides = array<i32>} : memref<64x128xf32, #tpu.memory_space<vmem>>, vector<16x128xf32>,
      %64 = vector.extract_strided_slice %32 {offsets = [0, 32], sizes = [8, 16], strides = [1, 1]} : vector<8x64xf32> to vector<8x16xf32>
      %65 = vector.extract_strided_slice %39 {offsets = [0, 32], sizes = [8, 16], strides = [1, 1]} : vector<8x64xf32> to vector<8x16xf32>
      %cst_49 = arith.constant dense<0.000000e+00> : vector<16x16xf32>
      %66 = tpu.matmul %64, %65, %cst_49 {dimension_numbers = #tpu.dot_dimension_numbers<[0], [0], [1], [1], [0, 1, 1, 1], [], []>} : vector<8x16xf32>, vector<8x16xf32>, vector<16x16xf32> -> vector<16x16xf32>
      %67 = arith.mulf %66, %66 : vector<16x16xf32>
      %cst_50 = arith.constant dense<0.000000e+00> : vector<16xf32>
      %68 = vector.multi_reduction <add>, %67, %cst_50 [1] : vector<16x16xf32> to vector<16xf32>
      %69 = vector.shape_cast %68 : vector<16xf32> to vector<16x1xf32>
      %70 = math.rsqrt %69 : vector<16x1xf32>
      %71 = vector.broadcast %70 : vector<16x1xf32> to vector<16x16xf32>
      %72 = arith.mulf %66, %71 : vector<16x16xf32>
      %c32 = arith.constant 32 : index
      %c0_51 = arith.constant 0 : index
      %73 = vector.load %arg8[%c32, %c0_51] : memref<64x128xf32, #tpu.memory_space<vmem>>, vector<16x128xf32>
      %cst_52 = arith.constant dense<0.000000e+00> : vector<16x128xf32>
      %74 = tpu.matmul %72, %73, %cst_52 {dimension_numbers = #tpu.dot_dimension_numbers<[1], [0], [0], [1], [0, 0, 1, 1], [], []>} : vector<16x16xf32>, vector<16x128xf32>, vector<16x128xf32> -> vector<16x128xf32>
      %c32_53 = arith.constant 32 : index
      %c0_54 = arith.constant 0 : index
      %75 = vector.load %arg16[%c32_53, %c0_54] : memref<64x128xf32, #tpu.memory_space<vmem>>, vector<16x128xf32>
      tpu.vector_store %arg16[%c32_53, %c0_54], %74 {strides = array<i32>} : memref<64x128xf32, #tpu.memory_space<vmem>>, vector<16x128xf32>,
      %76 = vector.extract_strided_slice %32 {offsets = [0, 48], sizes = [8, 16], strides = [1, 1]} : vector<8x64xf32> to vector<8x16xf32>
      %77 = vector.extract_strided_slice %39 {offsets = [0, 48], sizes = [8, 16], strides = [1, 1]} : vector<8x64xf32> to vector<8x16xf32>
      %cst_55 = arith.constant dense<0.000000e+00> : vector<16x16xf32>
      %78 = tpu.matmul %76, %77, %cst_55 {dimension_numbers = #tpu.dot_dimension_numbers<[0], [0], [1], [1], [0, 1, 1, 1], [], []>} : vector<8x16xf32>, vector<8x16xf32>, vector<16x16xf32> -> vector<16x16xf32>
      %79 = arith.mulf %78, %78 : vector<16x16xf32>
      %cst_56 = arith.constant dense<0.000000e+00> : vector<16xf32>
      %80 = vector.multi_reduction <add>, %79, %cst_56 [1] : vector<16x16xf32> to vector<16xf32>
      %81 = vector.shape_cast %80 : vector<16xf32> to vector<16x1xf32>
      %82 = math.rsqrt %81 : vector<16x1xf32>
      %83 = vector.broadcast %82 : vector<16x1xf32> to vector<16x16xf32>
      %84 = arith.mulf %78, %83 : vector<16x16xf32>
      %c48 = arith.constant 48 : index
      %c0_57 = arith.constant 0 : index
      %85 = vector.load %arg8[%c48, %c0_57] : memref<64x128xf32, #tpu.memory_space<vmem>>, vector<16x128xf32>
      %cst_58 = arith.constant dense<0.000000e+00> : vector<16x128xf32>
      %86 = tpu.matmul %84, %85, %cst_58 {dimension_numbers = #tpu.dot_dimension_numbers<[1], [0], [0], [1], [0, 0, 1, 1], [], []>} : vector<16x16xf32>, vector<16x128xf32>, vector<16x128xf32> -> vector<16x128xf32>
      %c48_59 = arith.constant 48 : index
      %c0_60 = arith.constant 0 : index
      %87 = vector.load %arg16[%c48_59, %c0_60] : memref<64x128xf32, #tpu.memory_space<vmem>>, vector<16x128xf32>
      tpu.vector_store %arg16[%c48_59, %c0_60], %86 {strides = array<i32>} : memref<64x128xf32, #tpu.memory_space<vmem>>, vector<16x128xf32>,
    } else {
    }
    %c0 = arith.constant 0 : index
    %c0_1 = arith.constant 0 : index
    %c0_2 = arith.constant 0 : index
    %3 = vector.load %arg2[%c0, %c0_1, %c0_2] : memref<1x8x32xf32, #tpu.memory_space<vmem>>, vector<1x8x32xf32>
    %4 = vector.shape_cast %3 : vector<1x8x32xf32> to vector<8x32xf32>
    %c0_3 = arith.constant 0 : index
    %c0_4 = arith.constant 0 : index
    %5 = vector.load %arg5[%c0_3, %c0_4] : memref<32x64xf32, #tpu.memory_space<vmem>>, vector<32x64xf32>
    %cst = arith.constant dense<0.000000e+00> : vector<8x64xf32>
    %6 = tpu.matmul %4, %5, %cst {dimension_numbers = #tpu.dot_dimension_numbers<[1], [0], [0], [1], [0, 0, 1, 1], [], []>} : vector<8x32xf32>, vector<32x64xf32>, vector<8x64xf32> -> vector<8x64xf32>
    %c0_5 = arith.constant 0 : index
    %c0_6 = arith.constant 0 : index
    %7 = vector.load %arg9[%c0_5, %c0_6] : memref<1x64xf32, #tpu.memory_space<vmem>>, vector<1x64xf32>
    %8 = vector.broadcast %7 : vector<1x64xf32> to vector<8x64xf32>
    %9 = arith.addf %6, %8 : vector<8x64xf32>
    %10 = arith.mulf %9, %9 : vector<8x64xf32>
    %c0_7 = arith.constant 0 : index
    %c0_8 = arith.constant 0 : index
    %11 = vector.load %arg14[%c0_7, %c0_8] : memref<64x64xf32, #tpu.memory_space<vmem>>, vector<64x64xf32>
    %cst_9 = arith.constant dense<0.000000e+00> : vector<8x64xf32>
    %12 = tpu.matmul %10, %11, %cst_9 {dimension_numbers = #tpu.dot_dimension_numbers<[1], [0], [0], [1], [0, 0, 1, 1], [], []>} : vector<8x64xf32>, vector<64x64xf32>, vector<8x64xf32> -> vector<8x64xf32>
    %c0_10 = arith.constant 0 : index
    %c0_11 = arith.constant 0 : index
    %13 = vector.load %arg13[%c0_10, %c0_11] : memref<1x64xf32, #tpu.memory_space<vmem>>, vector<1x64xf32>
    %14 = vector.broadcast %13 : vector<1x64xf32> to vector<8x64xf32>
    %15 = arith.mulf %9, %14 : vector<8x64xf32>
    %16 = math.rsqrt %12 : vector<8x64xf32>
    %17 = arith.mulf %15, %16 : vector<8x64xf32>
    %c0_12 = arith.constant 0 : index
    %c0_13 = arith.constant 0 : index
    %18 = vector.load %arg16[%c0_12, %c0_13] : memref<64x128xf32, #tpu.memory_space<vmem>>, vector<64x128xf32>
    %cst_14 = arith.constant dense<0.000000e+00> : vector<8x128xf32>
    %19 = tpu.matmul %17, %18, %cst_14 {dimension_numbers = #tpu.dot_dimension_numbers<[1], [0], [0], [1], [0, 0, 1, 1], [], []>} : vector<8x64xf32>, vector<64x128xf32>, vector<8x128xf32> -> vector<8x128xf32>
    %c0_15 = arith.constant 0 : index
    %c0_16 = arith.constant 0 : index
    %20 = vector.load %arg12[%c0_15, %c0_16] : memref<1x128xf32, #tpu.memory_space<vmem>>, vector<1x128xf32>
    %21 = vector.broadcast %20 : vector<1x128xf32> to vector<8x128xf32>
    %22 = arith.addf %19, %21 : vector<8x128xf32>
    %c0_17 = arith.constant 0 : index
    %c0_18 = arith.constant 0 : index
    %c0_19 = arith.constant 0 : index
    %23 = vector.load %arg15[%c0_17, %c0_18, %c0_19] : memref<1x8x128xf32, #tpu.memory_space<vmem>>, vector<1x8x128xf32>
    %24 = vector.shape_cast %23 : vector<1x8x128xf32> to vector<8x128xf32>
    %25 = vector.shape_cast %22 : vector<8x128xf32> to vector<1x8x128xf32>
    tpu.vector_store %arg15[%c0_17, %c0_18, %c0_19], %25 {strides = array<i32>} : memref<1x8x128xf32, #tpu.memory_space<vmem>>, vector<1x8x128xf32>,
    return
  }
  func.func @transform_0(%arg0: i32, %arg1: i32) -> (i32, i32, i32) {
    %c0_i32 = arith.constant 0 : i32
    %c0_i32_0 = arith.constant 0 : i32
    return %arg0, %arg1, %c0_i32 : i32, i32, i32
  }
  func.func @transform_1(%arg0: i32, %arg1: i32) -> (i32, i32, i32) {
    %c0_i32 = arith.constant 0 : i32
    %c0_i32_0 = arith.constant 0 : i32
    %c0_i32_1 = arith.constant 0 : i32
    return %arg0, %c0_i32, %c0_i32_0 : i32, i32, i32
  }
  func.func @transform_2(%arg0: i32, %arg1: i32) -> (i32, i32, i32) {
    %c0_i32 = arith.constant 0 : i32
    %c0_i32_0 = arith.constant 0 : i32
    %c0_i32_1 = arith.constant 0 : i32
    return %arg0, %c0_i32, %c0_i32_0 : i32, i32, i32
  }
  func.func @transform_3(%arg0: i32, %arg1: i32) -> (i32, i32) {
    %c0_i32 = arith.constant 0 : i32
    %c0_i32_0 = arith.constant 0 : i32
    %c0_i32_1 = arith.constant 0 : i32
    return %c0_i32, %c0_i32_0 : i32, i32
  }
  func.func @transform_4(%arg0: i32, %arg1: i32) -> (i32, i32) {
    %c0_i32 = arith.constant 0 : i32
    %c0_i32_0 = arith.constant 0 : i32
    %c0_i32_1 = arith.constant 0 : i32
    return %c0_i32, %c0_i32_0 : i32, i32
  }
  func.func @transform_5(%arg0: i32, %arg1: i32) -> (i32, i32) {
    %c0_i32 = arith.constant 0 : i32
    %c0_i32_0 = arith.constant 0 : i32
    %c0_i32_1 = arith.constant 0 : i32
    return %c0_i32, %c0_i32_0 : i32, i32
  }
  func.func @transform_6(%arg0: i32, %arg1: i32) -> (i32, i32) {
    %c0_i32 = arith.constant 0 : i32
    %c0_i32_0 = arith.constant 0 : i32
    %c0_i32_1 = arith.constant 0 : i32
    return %c0_i32, %c0_i32_0 : i32, i32
  }
  func.func @transform_7(%arg0: i32, %arg1: i32) -> (i32, i32) {
    %c0_i32 = arith.constant 0 : i32
    %c0_i32_0 = arith.constant 0 : i32
    %c0_i32_1 = arith.constant 0 : i32
    return %c0_i32, %c0_i32_0 : i32, i32
  }
  func.func @transform_8(%arg0: i32, %arg1: i32) -> (i32, i32) {
    %c0_i32 = arith.constant 0 : i32
    %c0_i32_0 = arith.constant 0 : i32
    %c0_i32_1 = arith.constant 0 : i32
    return %c0_i32, %c0_i32_0 : i32, i32
  }
  func.func @transform_9(%arg0: i32, %arg1: i32) -> (i32, i32) {
    %c0_i32 = arith.constant 0 : i32
    %c0_i32_0 = arith.constant 0 : i32
    %c0_i32_1 = arith.constant 0 : i32
    return %c0_i32, %c0_i32_0 : i32, i32
  }
  func.func @transform_10(%arg0: i32, %arg1: i32) -> (i32, i32) {
    %c0_i32 = arith.constant 0 : i32
    %c0_i32_0 = arith.constant 0 : i32
    %c0_i32_1 = arith.constant 0 : i32
    return %c0_i32, %c0_i32_0 : i32, i32
  }
  func.func @transform_11(%arg0: i32, %arg1: i32) -> (i32, i32) {
    %c0_i32 = arith.constant 0 : i32
    %c0_i32_0 = arith.constant 0 : i32
    %c0_i32_1 = arith.constant 0 : i32
    return %c0_i32, %c0_i32_0 : i32, i32
  }
  func.func @transform_12(%arg0: i32, %arg1: i32) -> (i32, i32) {
    %c0_i32 = arith.constant 0 : i32
    %c0_i32_0 = arith.constant 0 : i32
    %c0_i32_1 = arith.constant 0 : i32
    return %c0_i32, %c0_i32_0 : i32, i32
  }
  func.func @transform_13(%arg0: i32, %arg1: i32) -> (i32, i32, i32) {
    %c0_i32 = arith.constant 0 : i32
    %c0_i32_0 = arith.constant 0 : i32
    return %arg0, %arg1, %c0_i32 : i32, i32, i32
  }
}

</mosaic_0001>

<bundles_post_ra>
// kernel: tpu_custom_call.1
= control target key start
LH: loop header
LB: loop body
LE: loop exit
PB: predicated region body
PF: predicated region fallthrough
CT: control target
= control target key end

     0   :  { %s2478_s0 = inlined_call_operand.hbm [shape: f32[2,8,32], index: 0, kind: input, shape index: {}]   ;;  %s2479_s1 = inlined_call_operand.hbm [shape: f32[2,8,32], index: 1, kind: input, shape index: {}]   ;;  %s2480_s2 = inlined_call_operand.hbm [shape: f32[2,8,32], index: 2, kind: input, shape index: {}]   ;;  %s2481_s3 = inlined_call_operand.hbm [shape: f32[32,64], index: 3, kind: input, shape index: {}]   ;;  %s2482_s4 = inlined_call_operand.hbm [shape: f32[32,64], index: 4, kind: input, shape index: {}]   ;;  %s2483_s5 = inlined_call_operand.hbm [shape: f32[32,64], index: 5, kind: input, shape index: {}]   ;;  %s2484_s6 = inlined_call_operand.hbm [shape: f32[64,128], index: 6, kind: input, shape index: {}]   ;;  %s2485_s7 = inlined_call_operand.vmem [shape: f32[1,64], index: 7, kind: input, shape index: {}]   ;;  %s2486_s8 = inlined_call_operand.vmem [shape: f32[1,64], index: 8, kind: input, shape index: {}]   ;;  %s2487_s9 = inlined_call_operand.vmem [shape: f32[1,64], index: 9, kind: input, shape index: {}]   ;;  %s2488_s10 = inlined_call_operand.vmem [shape: f32[1,128], index: 10, kind: input, shape index: {}]   ;;  %s2489_s11 = inlined_call_operand.vmem [shape: f32[1,64], index: 11, kind: input, shape index: {}]   ;;  %s2490_s12 = inlined_call_operand.hbm [shape: f32[64,64], index: 12, kind: input, shape index: {}]   ;;  %s2491_s13 = inlined_call_operand.hbm [shape: f32[2,8,128], index: 13, kind: output, shape index: {}]  }
   0x1   :  { %2506 = sst [smem:[#allocation32_spill]] %s2479_s1 }
   0x2   :  { %2507 = sst [smem:[#allocation33_spill]] %s2481_s3 }
   0x3   :  { %2508 = sst [smem:[#allocation34_spill]] %s2482_s4 }
   0x4   :  { %2509 = sst [smem:[#allocation35_spill]] %s2483_s5 }
   0x5   :  { %2510 = sst [smem:[#allocation36_spill]] %s2484_s6 }
   0x6   :  { %2511 = sst [smem:[#allocation37_spill]] %s2488_s10 }
   0x7   :  { %2512 = sst [smem:[#allocation38_spill]] %s2489_s11 }
   0x8   :  { %2513 = sst [smem:[#allocation39_spill]] %s2490_s12 }
   0x9   :  { %2514 = sst [smem:[#allocation40_spill]] %s2491_s13 }
   0xa   :  { %18 = vsyncpa [#allocation4], 0 }
   0xb   :  { %20 = vsyncpa [#allocation4 + $0x1], 0 }
   0xc   :  { %21 = vsyncpa [#allocation7], 0 }
   0xd   :  { %23 = vsyncpa [#allocation7 + $0x1], 0 }
   0xe   :  { %24 = vsyncpa [#allocation10], 0 }
   0xf   :  { %25 = vsyncpa [#allocation13], 0 }
  0x10   :  { %26 = vsyncpa [#allocation16], 0 }
  0x11   :  { %27 = vsyncpa [#allocation5], 0 }
  0x12   :  { %29 = vsyncpa [#allocation5 + $0x1], 0  ;;  %s2149_s25 = smov 0   ;;  %s2151_s26 = smov 0  }
  0x13   :  { %s2153_s27 = smov 0   ;;  %s2155_s28 = smov 0  }
  0x14   :  { %s2157_s29 = smov 0   ;;  %s2159_s30 = smov 0  }
  0x15 LB: > { %2515 = sst [smem:[#allocation24_spill]] %s2047_s25  ;;  %s2180_s14 = sadd.s32 4294967295, %s2067_s30   ;;  %s2067_s30 = sphi %s2159_s30, %s35_s30   ;;  %s2063_s29 = sphi %s2157_s29, %s2549_s29   ;;  %s2059_s28 = sphi %s2155_s28, %s2548_s28   ;;  %s2055_s27 = sphi %s2153_s27, %s2552_s27   ;;  %s2051_s26 = sphi %s2151_s26, %s2551_s26   ;;  %s2047_s25 = sphi %s2149_s25, %s2550_s25  }
  0x16   : > { %2516 = sst [smem:[#allocation25_spill]] %s2059_s28  ;;  %p1528_p0 = scmp.ge.s32.totalorder %s2067_s30, 1 }
  0x17   : > { %2517 = sst [smem:[#allocation26_spill]] %s2063_s29  ;;  %p70_p1 = scmp.eq.s32.totalorder %s2180_s14, 0 }
  0x18   : > { %2518 = sst [smem:[#allocation27_spill]] %s2067_s30  ;;  %p370_p2 = scmp.lt.s32.totalorder %s2067_s30, 3 }
  0x19   : > { %s2519_s3 = sld [smem:[#allocation33_spill]]  ;;  %s2069_s19 = smov [#allocation9]  }
  0x1a   : > { %p2188_p3 = pnand %p1528_p0, %p370_p2  ;;  %s383_s20 = sshll.u32 %s2069_s19, 4  ;;  %s384_s20 = int_to_ptr.vmem [resolvable:$true] %s383_s20 }
  0x1b   : > { %p1534_p6 = scmp.ge.s32.totalorder %s2067_s30, 2  ;;  %s2522_s5 = sld [smem:[#allocation35_spill]] }
  0x1c   : > { %p1605_p4 = pneg %p2188_p3  ;;  %s2492_s15 = smov 128  }
  0x1d   : > { %s2494_s16 = smov 8   ;;  %s2072_s19 = smov [#allocation12]  }
  0x1e   : > { %p2196_p5 = pnand %p1605_p4, %p70_p1  ;;  %s1527_s22 = sadd.s32 4294967294, %s2067_s30  }
  0x1f   : > { %s381_s17 = sshll.u32 %s2519_s3, 4  ;;  %s411_s3 = sshll.u32 %s2072_s19, 4  ;;  %s382_s17 = int_to_ptr.hbm [resolvable:$true] %s381_s17  ;;  %s412_s3 = int_to_ptr.vmem [resolvable:$true] %s411_s3 }
  0x20   : > { %1608 = dma.hbm_to_vmem [thread:$0]  (!%p2196_p5), %s382_s17, 512, %s384_s20, [#allocation10], %s2492_s15, %s2492_s15, %s2494_s16  }
  0x21   : > { %s409_s24 = sshll.u32 %s2522_s5, 4  ;;  %s47_s23 = sadd.s32 1, %s2063_s29  ;;  %s410_s24 = int_to_ptr.hbm [resolvable:$true] %s409_s24 }
  0x22   : > { %1614 = dma.hbm_to_vmem [thread:$0]  (!%p2196_p5), %s410_s24, 512, %s412_s3, [#allocation13], %s2492_s15, %s2492_s15, %s2494_s16  }
  0x23   : > { %p49_p7 = scmp.ge.s32.totalorder %s47_s23, 2  ;;  %s56_s5 = sadd.s32 1, %s2055_s27 }
  0x24   : > { %p63_p8 = scmp.ne.s32.totalorder %s2055_s27, %s2051_s26  ;;  %p64_p9 = scmp.eq.s32.totalorder %s2067_s30, 0 }
  0x25   : > { %s2554_s23 = smov (%p49_p7, %s47_s23), 0  ;;  %p69_p11 = scmp.ne.s32.totalorder %s2051_s26, %s2047_s25 }
  0x26   : > { %2523 = sst [smem:[#allocation28_spill]] %s2554_s23  ;;  %p2222_p10 = por %p64_p9, %p63_p8 }
  0x27   : > { %s51_s3 = ssub.s32 %s2063_s29, %s2554_s23  ;;  %p357_p12 = scmp.eq.s32.totalorder %s2180_s14, 1 }
  0x28   : > { %p54_p13 = scmp.eq.s32.totalorder %s51_s3, 0  ;;  %p2233_p0 = por %p70_p1, %p69_p11 }
  0x29   : > { %p2237_p2 = por %p357_p12, %p63_p8  ;;  %p363_p4 = scmp.eq.s32.totalorder %s1527_s22, 1 }
  0x2a   : > { %s2242_s19 = scalar_select %p54_p13, %s2055_s27, %s56_s5  }
  0x2b   : > { %s2526_s24 = scalar_select %p2237_p2, 1, 0 }
  0x2c   : > { %2528 = sst [smem:[#allocation30_spill]] %s2242_s19  ;;  %p2244_p7 = por %p363_p4, %p69_p11 }
  0x2d   : > { %2527 = sst [smem:[#allocation29_spill]] %s2526_s24  ;;  %p1640_p9 = scmp.lt.s32.totalorder %s2067_s30, 2 }
  0x2e   : > { %s2529_s15 = scalar_select %p2244_p7, 1, 0 }
  0x2f   : > { %s2502_s16 = sand.u32 1, %s2055_s27   ;;  %s2251_s23 = sshll.u32 %s2063_s29, 3 }
  0x30   : > { %2530 = sst [smem:[#allocation31_spill]] %s2529_s15  ;;  %s2255_s3 = sshll.u32 %s2502_s16, 3 }
  0x31   : > { %p2259_p8 = pnand %p1640_p9, %p2222_p10  ;;  %s488_s5 = sand.u32 1, %s2067_s30  }
  0x32   : > { %s2532_s1 = sld [smem:[#allocation32_spill]]  ;;  %s492_s10 = scalar_lea.vmem [#allocation6], %s2255_s3 }
  0x33   : > { %s500_s29 = sshll.u32 %s492_s10, 4  ;;  %s2533_s4 = sld [smem:[#allocation34_spill]]  ;;  %s501_s29 = int_to_ptr.vmem [resolvable:$true] %s500_s29 }
  0x34   : > { %s2272_s11 = scalar_lea.sflag [#allocation7], %s488_s5  ;;  %s2073_s19 = smov [#allocation11]  }
  0x35   : > { %s397_s22 = sshll.u32 %s2073_s19, 4  ;;  %s2534_s6 = sld [smem:[#allocation36_spill]]  ;;  %s398_s22 = int_to_ptr.vmem [resolvable:$true] %s397_s22 }
  0x36   : > { %s2535_s13 = smov 8   ;;  %s2536_s16 = smov 128  }
  0x37   : > { %s2537_s12 = sld [smem:[#allocation39_spill]]  ;;  %s472_s5 = scalar_lea.vmem [#allocation3], %s2255_s3 }
  0x38   : > { %s496_s15 = scalar_lea.hbm %s2532_s1, %s2251_s23  ;;  %s2075_s1 = smov [#allocation15]  }
  0x39   : > { %s498_s24 = sshll.u32 %s496_s15, 4  ;;  %s395_s17 = sshll.u32 %s2533_s4, 4  ;;  %s499_s24 = int_to_ptr.hbm [resolvable:$true] %s498_s24  ;;  %s396_s17 = int_to_ptr.hbm [resolvable:$true] %s395_s17 }
  0x3a   : > { %1627 = dma.hbm_to_vmem [thread:$0]  (!%p2259_p8), %s499_s24, 128, %s501_s29, %s2272_s11  }
  0x3b   : > { %s423_s15 = sshll.u32 %s2534_s6, 4  ;;  %s2074_s24 = smov [#allocation14]   ;;  %s424_s15 = int_to_ptr.hbm [resolvable:$true] %s423_s15 }
  0x3c   : > { %1611 = dma.hbm_to_vmem [thread:$0]  (!%p2196_p5), %s396_s17, 512, %s398_s22, [#allocation10], %s2536_s16, %s2536_s16, %s2535_s13  }
  0x3d   : > { %s452_s29 = sshll.u32 %s2537_s12, 4  ;;  %s425_s19 = sshll.u32 %s2074_s24, 4  ;;  %s453_s29 = int_to_ptr.hbm [resolvable:$true] %s452_s29  ;;  %s426_s19 = int_to_ptr.vmem [resolvable:$true] %s425_s19 }
  0x3e   : > { %1617 = dma.hbm_to_vmem [thread:$0]  (!%p2196_p5), %s424_s15, 1024, %s426_s19, [#allocation13], %s2536_s16, %s2536_s16, %s2535_s13  }
  0x3f   : > { %s454_s10 = sshll.u32 %s2075_s1, 4  ;;  %s477_s22 = scalar_lea.hbm %s2478_s0, %s2251_s23  ;;  %s455_s10 = int_to_ptr.vmem [resolvable:$true] %s454_s10 }
  0x40   : > { %1620 = dma.hbm_to_vmem [thread:$0]  (!%p2196_p5), %s453_s29, 1024, %s455_s10, [#allocation16], %s2536_s16, %s2536_s16, %s2535_s13  }
  0x41   : > { %s481_s24 = sshll.u32 %s472_s5, 4  ;;  %s479_s6 = sshll.u32 %s477_s22, 4  ;;  %s482_s24 = int_to_ptr.vmem [resolvable:$true] %s481_s24  ;;  %s480_s6 = int_to_ptr.hbm [resolvable:$true] %s479_s6 }
  0x42   : > { %s2538_s15 = sand.u32 1, %s2055_s27   ;;  %s515_s12 = scalar_lea.hbm %s2480_s2, %s2251_s23 }
  0x43   : > { %s469_s19 = scalar_lea.sflag [#allocation4], %s2538_s15  ;;  %s511_s30 = scalar_lea.vmem [#allocation8], %s2255_s3 }
  0x44   : > { %1624 = dma.hbm_to_vmem [thread:$0]  (!%p2259_p8), %s480_s6, 128, %s482_s24, %s469_s19  }
  0x45   : > { %s519_s28 = sshll.u32 %s511_s30, 4  ;;  %s517_s13 = sshll.u32 %s515_s12, 4  ;;  %s520_s28 = int_to_ptr.vmem [resolvable:$true] %s519_s28  ;;  %s518_s13 = int_to_ptr.hbm [resolvable:$true] %s517_s13 }
  0x46   : > { %1630 = dma.hbm_to_vmem [thread:$0]  (!%p2259_p8), %s518_s13, 128, %s520_s28, %s2272_s11  }
  0x47   : > { %528 = sbr.rel (%p2188_p3) target bundleno = 1116 (0x45c), region = 72  ;;  %s2318_s16 = sand.u32 (!%p2188_p3), 1, %s2051_s26  }
  0x48   : > { %s2321_s6 = sshll.u32 (!%p2188_p3), %s2318_s16, 3  ;;  %s531_s23 = scalar_lea.sflag (!%p2188_p3), [#allocation4], %s2318_s16 }
  0x49   : > { %s534_s3 = scalar_lea.vmem (!%p2188_p3), [#allocation3], %s2321_s6 }
  0x4c   : > { %2022 = dma.done.wait (%p2233_p0), %s531_s23, 128  }
  0x4d   : > { %2024 = vsyncadd (%p2233_p0), %s531_s23, 4294967168  ;;  %s540_s11 = sand.u32 1, %s2180_s14   ;;  %s544_s25 = scalar_lea.vmem [#allocation6], %s2321_s6 }
  0x4e   : > { %s541_s12 = scalar_lea.sflag [#allocation7], %s540_s11 }
  0x4f   : > { %2026 = dma.done.wait (%p2233_p0), %s541_s12, 256  }
  0x50   : > { %2028 = vsyncadd (%p2233_p0), %s541_s12, 4294967040  ;;  %s554_s28 = scalar_lea.vmem [#allocation8], %s2321_s6 }
  0x51   : > { %2030 = dma.done.wait (%p70_p1), [#allocation10], 1024  }
  0x52   : > { %2032 = vsyncadd (%p70_p1), [#allocation10], 4294966272 }
  0x53   : > { %2034 = dma.done.wait (%p70_p1), [#allocation13], 1536  }
  0x54   : > { %2036 = vsyncadd (%p70_p1), [#allocation13], 4294965760 }
  0x55   : > { %2038 = dma.done.wait (%p70_p1), [#allocation16], 1024  }
  0x56   : > { %2040 = vsyncadd (%p70_p1), [#allocation16], 4294966272  ;;  %v641_v0 = vld [vmem:[#allocation11 + $0x18] sm:$0xff]  ;;  %v640_v2 = vld [vmem:[#allocation11 + $0x10] sm:$0xff]  ;;  %vm646_vm0 = vcmask 261120   ;;  %s2076_s29 = smov 96  }
  0x57   : > { %v674_v1 = vld [vmem:[#allocation12 + $0x18] sm:$0xff]  ;;  %662 = vmatpush.msra.mxu0 %v641_v0  ;;  %v673_v3 = vld [vmem:[#allocation12 + $0x10] sm:$0xff]  ;;  %v639_v4 = vld [vmem:[#allocation11 + $0x8] sm:$0xff]  ;;  %s2077_s10 = smov 112   ;;  %s2078_s4 = smov 80   ;;  %vm734_vm1 = vcmask 64512  }
  0x58   : > { %694 = vmatpush.msra.mxu1 %v674_v1  ;;  %v672_v5 = vld [vmem:[#allocation12 + $0x8] sm:$0xff]  ;;  %v638_v6 = vld [vmem:[#allocation11] sm:$0xff]  ;;  %v670_v9 = vld [vmem:[%s554_s28] sm:$0xff]  ;;  %vm766_vm2 = vcmask 130048   ;;  %s2539_s5 = sld [smem:[#allocation25_spill]]  ;;  %s632_s30 = scalar_lea.vmem [#allocation17], %s2321_s6 }
  0x59   : > { %663 = vmatpush.msra.mxu0 %v640_v2  ;;  %v671_v7 = vld [vmem:[#allocation12] sm:$0xff]  ;;  %v1706_v10 = vld [vmem:[%s2486_s8] ss:$0 sm:$0xff]  ;;  %v1224_v38 = vld [vmem:[#allocation9 + $0x18] sm:$0xff]  ;;  %s2540_s19 = sld [smem:[#allocation38_spill]]  ;;  %s1352_s14 = sshll.u32 %s632_s30, 4  ;;  %s1353_s14 = int_to_ptr.vmem [resolvable:$true] %s1352_s14 }
  0x5a   : > { %695 = vmatpush.msra.mxu1 %v673_v3  ;;  %v637_v8 = vld [vmem:[%s544_s25] sm:$0xff]  ;;  %v1707_v11 = vld [vmem:[%s2487_s9] ss:$0 sm:$0xff]  ;;  %s2541_s23 = sld [smem:[#allocation40_spill]]  ;;  %s1339_s20 = scalar_lea.sflag [#allocation5], %s2318_s16 }
  0x5b   : > { %664 = vmatpush.msra.mxu0 %v639_v4  ;;  %v1223_v39 = vld [vmem:[#allocation9 + $0x10] sm:$0xff]  ;;  %v1222_v41 = vld [vmem:[#allocation9 + $0x8] sm:$0xff]  ;;  %v1221_v42 = vld [vmem:[#allocation9] sm:$0xff]  ;;  %s2543_s28 = sld [smem:[#allocation37_spill]] }
  0x5c   : > { %696 = vmatpush.msra.mxu1 %v672_v5  ;;  %v1220_v43 = vld [vmem:[%s534_s3] sm:$0xff]  ;;  %v796_v53 = vld [vmem:[#allocation14 + $0x8] sm:$0xff]  ;;  %v795_v54 = vld [vmem:[#allocation14] sm:$0xff] }
  0x5d   : > { %665 = vmatpush.msra.mxu0 %v638_v6  ;;  %817 = vmatpush.msra.mxu3 %v796_v53 }
  0x5e   : > { %697 = vmatpush.msra.mxu1 %v671_v7  ;;  %1551 = vmatmul.msk.f32.vlgmr.msra.gmra.mxu0 %vm646_vm0, %v637_v8  ;;  %s1573_s21 = sshll.u32 %s2539_s5, 3 }
  0x5f   : > { %1552 = vmatmul.msk.f32.vlgmr.msra.gmra.mxu1 %vm646_vm0, %v670_v9  ;;  %818 = vmatpush.msra.mxu3 %v795_v54 }
  0x60   : > { %s1350_s11 = scalar_lea.hbm %s2541_s23, %s1573_s21  ;;  %s1989_s22 = scalar_lea.hbm %s2541_s23, 16 }
  0x61   : > { %s1354_s18 = sshll.u32 %s1350_s11, 4  ;;  %s1355_s18 = int_to_ptr.hbm [resolvable:$true] %s1354_s18 }
  0xdb   : > { %v667_v12 = vpop.f32.mrf.mxu0 }
  0xdc   : > { %v699_v13 = vpop.f32.mrf.mxu1  ;;  %v668_v14 = vadd.f32 %v1706_v10, %v667_v12 }
  0xdd   : > { %v700_v15 = vadd.f32 %v1707_v11, %v699_v13 }
  0xde   : > { %829 = vrot.lane.b32.xlu0 %v668_v14, %s2077_s10 }
  0xdf   : > { %995 = vrot.lane.b32.xlu2 %v700_v15, %s2076_s29  ;;  %865 = vrot.lane.b32.xlu1 %v700_v15, %s2077_s10 }
  0xe0   : > { %756 = vmatpush.msra.mxu2 %v700_v15 }
  0xe6   : > { %960 = vrot.lane.b32.xlu0 %v668_v14, %s2076_s29  ;;  %s1983_s29 = sshra.s32 %s1355_s18, 4  ;;  %s1984_s29 = int_to_ptr.hbm [resolvable:$true] %s1983_s29 }
  0xe7   : > { %1090 = vrot.lane.b32.xlu2 %v668_v14, %s2078_s4  ;;  %s1985_s10 = scalar_lea.hbm %s1984_s29, 8  ;;  %p1990_p10 = scmp.lt.s32.totalorder %s1984_s29, %s2541_s23 }
  0xe8   : > { %p1986_p1 = scmp.ne.s32.totalorder %s1984_s29, %s1985_s10  ;;  %p1991_p11 = scmp.lt.s32.totalorder %s1989_s22, %s1985_s10 }
  0xea   : > { %p1987_p3 = pnand %p1986_p1, %p2237_p2  ;;  %p1992_p12 = por %p1991_p11, %p1990_p10 }
  0xec   : > { %p1988_p5 = pneg %p1987_p3 }
  0xee   : > { %p1993_p13 = pnand %p1992_p12, %p1988_p5 }
 0x114   : > { %702 = vxpose.xlu1.b32.start.end [1/1] (short) (narrow) %v668_v14, 16 }
 0x139   : > { %v996_v19 = vpop.permute.xlu2 %995 }
 0x141   : > { %v1091_v20 = vpop.permute.xlu2 %1090 }
 0x150   : > { %v830_v17 = vpop.permute.xlu0 %829 }
 0x151   : > { %v866_v16 = vpop.permute.xlu1 %865  ;;  %832 = vxpose.xlu0.b32.start.end [1/1] (short) (narrow) %v830_v17, 16 }
 0x152   : > { %889 = vmatpush.msrb.mxu0 %v866_v16  ;;  %1576 = vmatpush.msrb.mxu2 %v866_v16  ;;  %v927_v16 = vld [vmem:[#allocation14 + $0x10] sm:$0xff] }
 0x158   : > { %v961_v18 = vpop.permute.xlu0 %960 }
 0x159   : > { %963 = vxpose.xlu2.b32.start.end [1/1] (short) (narrow) %v961_v18, 16 }
 0x169   : > { %1093 = vxpose.xlu2.b32.start.end [1/1] (short) (narrow) %v1091_v20, 16 }
 0x1b8   : > { %v718_v21 = vpop.trf.xlu1 }
 0x1b9   : > { %1553 = vmatmul.msk.f32.vlgmr.msra.gmra.mxu2 %vm734_vm1, %v718_v21  ;;  %v1057_v21 = vld [vmem:[#allocation14 + $0x20] sm:$0xff] }
 0x1ba   : > { %1019 = vmatpush.msra.mxu2 %v996_v19  ;;  %v1058_v19 = vld [vmem:[#allocation14 + $0x28] sm:$0xff] }
 0x1bb   : > { %1079 = vmatpush.msrb.mxu3 %v1058_v19 }
 0x1bd   : > { %1080 = vmatpush.msrb.mxu3 %v1057_v21 }
 0x1c0   : > { %v719_v22 = vpop.trf.xlu1 }
 0x1c1   : > { %1554 = vmatmul.msk.f32.gmra.mxu2 %vm734_vm1, %v719_v22 }
 0x1c7   : > { %1125 = vrot.lane.b32.xlu0 %v700_v15, %s2078_s4  ;;  %v928_v15 = vld [vmem:[#allocation14 + $0x18] sm:$0xff] }
 0x1c8   : > { %949 = vmatpush.msrb.mxu1 %v928_v15 }
 0x1ca   : > { %950 = vmatpush.msrb.mxu1 %v927_v16 }
 0x1f2   : > { %v979_v25 = vpop.trf.xlu2 }
 0x1f5   : > { %v848_v23 = vpop.trf.xlu0 }
 0x1f6   : > { %1557 = vmatmul.msk.f32.vlgmr.msrb.gmra.mxu0 %vm734_vm1, %v848_v23  ;;  %v1261_v23 = vld [vmem:[#allocation15 + $0x38] sm:$0xff] }
 0x1fa   : > { %v980_v26 = vpop.trf.xlu2 }
 0x1fd   : > { %v849_v24 = vpop.trf.xlu0 }
 0x1fe   : > { %1558 = vmatmul.msk.f32.vlgmr.msrb.gmra.mxu2 %vm734_vm1, %v849_v24 }
 0x1ff   : > { %1245 = vmatpush.msrb.mxu2 %v1224_v38 }
 0x201   : > { %1246 = vmatpush.msrb.mxu2 %v1223_v39 }
 0x202   : > { %v1109_v27 = vpop.trf.xlu2 }
 0x203   : > { %1247 = vmatpush.msrb.mxu2 %v1222_v41 }
 0x205   : > { %1248 = vmatpush.msrb.mxu2 %v1221_v42 }
 0x206   : > { %1561 = vmatmul.msk.f32.vlgmr.msra.gmra.mxu2 %vm734_vm1, %v979_v25  ;;  %v1260_v25 = vld [vmem:[#allocation15 + $0x30] sm:$0xff] }
 0x20a   : > { %v1110_v32 = vpop.trf.xlu2 }
 0x20e   : > { %1562 = vmatmul.msk.f32.gmra.mxu2 %vm734_vm1, %v980_v26 }
 0x216   : > { %1569 = vmatmul.msk.f32.vlgmr.msrb.gmra.mxu2 %vm646_vm0, %v1220_v43 }
 0x239   : > { %v1126_v28 = vpop.permute.xlu0 %1125 }
 0x23a   : > { %1149 = vmatpush.msra.mxu0 %v1126_v28 }
 0x23b   : > { %1565 = vmatmul.msk.f32.vlgmr.msra.gmra.mxu0 %vm734_vm1, %v1109_v27  ;;  %v1259_v27 = vld [vmem:[#allocation15 + $0x28] sm:$0xff] }
 0x23c   : > { %v2362_v29 = vpop.f32.mrf.mxu2 }
 0x23d   : > { %v764_v30 = vmul.f32 %v2362_v29, %v2362_v29 }
 0x23f   : > { %v767_v31 = vsel %vm766_vm2, %v764_v30, 0.0 }
 0x240   : > { %768 = vadd.xlane.f32.xlu1 %v767_v31 }
 0x243   : > { %1566 = vmatmul.msk.f32.gmra.mxu0 %vm734_vm1, %v1110_v32  ;;  %v1257_v32 = vld [vmem:[#allocation15 + $0x18] sm:$0xff] }
 0x244   : > { %v2368_v33 = vpop.f32.mrf.mxu2 }
 0x245   : > { %v765_v34 = vmul.f32 %v2368_v33, %v2368_v33 }
 0x247   : > { %v770_v35 = vsel %vm766_vm2, %v765_v34, 0.0 }
 0x248   : > { %771 = vadd.xlane.f32.xlu2 %v770_v35  ;;  %v1255_v35 = vld [vmem:[#allocation15 + $0x8] sm:$0xff] }
 0x273   : > { %v2374_v36 = vpop.f32.mrf.mxu0 }
 0x274   : > { %v897_v37 = vmul.f32 %v2374_v36, %v2374_v36 }
 0x276   : > { %v899_v40 = vsel %vm766_vm2, %v897_v37, 0.0  ;;  %v1254_v37 = vld [vmem:[#allocation15] sm:$0xff] }
 0x277   : > { %900 = vadd.xlane.f32.xlu0 %v899_v40 }
 0x281   : > { %v2382_v44 = vpop.f32.mrf.mxu2 }
 0x282   : > { %v898_v51 = vmul.f32 %v2382_v44, %v2382_v44 }
 0x284   : > { %v902_v52 = vsel %vm766_vm2, %v898_v51, 0.0 }
 0x289   : > { %v2384_v45 = vpop.f32.mrf.mxu2 }
 0x28a   : > { %v1027_v46 = vmul.f32 %v2384_v45, %v2384_v45 }
 0x28c   : > { %v1029_v47 = vsel %vm766_vm2, %v1027_v46, 0.0 }
 0x28d   : > { %1030 = vadd.xlane.f32.xlu1 %v1029_v47 }
 0x291   : > { %v2389_v48 = vpop.f32.mrf.mxu2 }
 0x292   : > { %v1028_v49 = vmul.f32 %v2389_v48, %v2389_v48 }
 0x294   : > { %v1032_v50 = vsel %vm766_vm2, %v1028_v49, 0.0 }
 0x295   : > { %1033 = vadd.xlane.f32.xlu1 %v1032_v50 }
 0x29d   : > { %903 = vadd.xlane.f32.xlu1 %v902_v52 }
 0x2b3   : > { %v769_v55 = vpop.xlane.xlu1 %768 }
 0x2b4   : > { %1711 = vrsqrt.f32 %v769_v55  ;;  %vm779_vm3 = vweird.f32 %v769_v55 }
 0x2b8   : > { %v2397_v57 = vpop.f32.mrf.mxu0 }
 0x2b9   : > { %v1157_v59 = vmul.f32 %v2397_v57, %v2397_v57 }
 0x2ba   : > { %v1712_v56 = vpop.eup %1711 }
 0x2bb   : > { %v774_v58 = vmul.f32 %v1712_v56, %v769_v55  ;;  %v772_v60 = vpop.xlane.xlu2 %771  ;;  %v1159_v62 = vsel %vm766_vm2, %v1157_v59, 0.0  ;;  %vm780_vm4 = vweird.f32 %v1712_v56  ;;  %v1708_v59 = vld [vmem:[%s2485_s7] ss:$0 sm:$0xff] }
 0x2bc   : > { %1713 = vrsqrt.f32 %v772_v60  ;;  %1160 = vadd.xlane.f32.xlu1 %v1159_v62  ;;  %vm781_vm5 = vmor %vm779_vm3, %vm780_vm4  ;;  %vm789_vm6 = vweird.f32 %v772_v60  ;;  %v1250_v62 = vpop.f32.mrf.mxu2 }
 0x2bd   : > { %v775_v61 = vmul.f32 %v1712_v56, %v774_v58 }
 0x2bf   : > { %v776_v63 = vmul.f32 0.5, %v775_v61 }
 0x2c0   : > { %v2402_v2 = vpop.f32.mrf.mxu0 }
 0x2c1   : > { %v777_v0 = vsub.f32 1.5, %v776_v63  ;;  %v1158_v5 = vmul.f32 %v2402_v2, %v2402_v2 }
 0x2c2   : > { %v1714_v1 = vpop.eup %1713 }
 0x2c3   : > { %v778_v3 = vmul.f32 %v1712_v56, %v777_v0  ;;  %v784_v4 = vmul.f32 %v1714_v1, %v772_v60  ;;  %v1162_v7 = vsel %vm766_vm2, %v1158_v5, 0.0  ;;  %vm790_vm7 = vweird.f32 %v1714_v1 }
 0x2c4   : > { %1163 = vadd.xlane.f32.xlu2 %v1162_v7  ;;  %vm791_vm8 = vmor %vm789_vm6, %vm790_vm7  ;;  %v2420_v0 = vadd.f32 %v1708_v59, %v1250_v62  ;;  %vm1262_vm6 = vcmask 523264   ;;  %v1187_v7 = vld [vmem:[#allocation14 + $0x30] sm:$0xff] }
 0x2c5   : > { %v785_v6 = vmul.f32 %v1714_v1, %v784_v4  ;;  %v782_v8 = vsel %vm781_vm5, %v1712_v56, %v778_v3  ;;  %v1188_v4 = vld [vmem:[#allocation14 + $0x38] sm:$0xff] }
 0x2c6   : > { %v793_v9 = vmul.f32 %v782_v8, %v2362_v29  ;;  %v1258_v29 = vld [vmem:[#allocation15 + $0x20] sm:$0xff]  ;;  %v1253_v5 = vmul.f32 %v2420_v0, %v2420_v0  ;;  %1209 = vmatpush.msra.mxu1 %v1188_v4 }
 0x2c7   : > { %v786_v10 = vmul.f32 0.5, %v785_v6 }
 0x2c8   : > { %1555 = vmatmul.msk.f32.vlgmr.msra.gmra.mxu3 %vm766_vm2, %v793_v9  ;;  %1210 = vmatpush.msra.mxu1 %v1187_v7 }
 0x2c9   : > { %v787_v11 = vsub.f32 1.5, %v786_v10  ;;  %1274 = vmatpush.msra.mxu3 %v1261_v23 }
 0x2cb   : > { %v788_v12 = vmul.f32 %v1714_v1, %v787_v11  ;;  %1275 = vmatpush.msra.mxu3 %v1260_v25 }
 0x2cd   : > { %v792_v13 = vsel %vm791_vm8, %v1714_v1, %v788_v12  ;;  %1276 = vmatpush.msra.mxu3 %v1259_v27 }
 0x2ce   : > { %v794_v14 = vmul.f32 %v792_v13, %v2368_v33  ;;  %v1256_v33 = vld [vmem:[#allocation15 + $0x10] sm:$0xff] }
 0x2cf   : > { %1277 = vmatpush.msra.mxu3 %v1258_v29 }
 0x2d0   : > { %1556 = vmatmul.msk.f32.gmra.mxu3 %vm766_vm2, %v794_v14 }
 0x2d1   : > { %1278 = vmatpush.msra.mxu3 %v1257_v32 }
 0x2d3   : > { %1279 = vmatpush.msra.mxu3 %v1256_v33 }
 0x2d5   : > { %1280 = vmatpush.msra.mxu3 %v1255_v35 }
 0x2d7   : > { %1281 = vmatpush.msra.mxu3 %v1254_v37 }
 0x2ea   : > { %v901_v17 = vpop.xlane.xlu0 %900 }
 0x2eb   : > { %1715 = vrsqrt.f32 %v901_v17  ;;  %vm911_vm9 = vweird.f32 %v901_v17 }
 0x2f1   : > { %v1716_v18 = vpop.eup %1715 }
 0x2f2   : > { %v906_v20 = vmul.f32 %v1716_v18, %v901_v17  ;;  %vm912_vm10 = vweird.f32 %v1716_v18 }
 0x2f3   : > { %vm913_vm11 = vmor %vm911_vm9, %vm912_vm10 }
 0x2f4   : > { %v907_v22 = vmul.f32 %v1716_v18, %v906_v20 }
 0x2f6   : > { %v908_v24 = vmul.f32 0.5, %v907_v22 }
 0x2f8   : > { %v909_v26 = vsub.f32 1.5, %v908_v24 }
 0x2fa   : > { %v910_v28 = vmul.f32 %v1716_v18, %v909_v26 }
 0x2fc   : > { %v914_v30 = vsel %vm913_vm11, %v1716_v18, %v910_v28 }
 0x2fd   : > { %v925_v31 = vmul.f32 %v914_v30, %v2374_v36 }
 0x2ff   : > { %1559 = vmatmul.msk.f32.vlgmr.msrb.gmra.mxu1 %vm766_vm2, %v925_v31 }
 0x300   : > { %v1031_v34 = vpop.xlane.xlu1 %1030 }
 0x301   : > { %1717 = vrsqrt.f32 %v1031_v34  ;;  %vm1041_vm12 = vweird.f32 %v1031_v34 }
 0x307   : > { %v1718_v38 = vpop.eup %1717 }
 0x308   : > { %v1036_v39 = vmul.f32 %v1718_v38, %v1031_v34  ;;  %v1034_v40 = vpop.xlane.xlu1 %1033  ;;  %vm1042_vm13 = vweird.f32 %v1718_v38 }
 0x309   : > { %1719 = vrsqrt.f32 %v1034_v40  ;;  %vm1043_vm14 = vmor %vm1041_vm12, %vm1042_vm13  ;;  %vm1051_vm15 = vweird.f32 %v1034_v40 }
 0x30a   : > { %v1037_v41 = vmul.f32 %v1718_v38, %v1036_v39  ;;  %v1709_v39 = vld [vmem:[%s2540_s19] ss:$0 sm:$0xff] }
 0x30c   : > { %v1038_v42 = vmul.f32 0.5, %v1037_v41  ;;  %v1290_v41 = vmul.f32 %v1709_v39, %v2420_v0 }
 0x30e   : > { %v1039_v36 = vsub.f32 1.5, %v1038_v42 }
 0x30f   : > { %v1720_v43 = vpop.eup %1719 }
 0x310   : > { %v1040_v46 = vmul.f32 %v1718_v38, %v1039_v36  ;;  %v1046_v47 = vmul.f32 %v1720_v43, %v1034_v40  ;;  %v904_v49 = vpop.xlane.xlu1 %903  ;;  %vm1052_vm0 = vweird.f32 %v1720_v43  ;;  %v1710_v36 = vld [vmem:[%s2543_s28] ss:$0 sm:$0xff] }
 0x311   : > { %1721 = vrsqrt.f32 %v904_v49  ;;  %vm1053_vm1 = vmor %vm1051_vm15, %vm1052_vm0  ;;  %vm921_vm4 = vweird.f32 %v904_v49 }
 0x312   : > { %v1044_v50 = vsel %vm1043_vm14, %v1718_v38, %v1040_v46  ;;  %v1047_v51 = vmul.f32 %v1720_v43, %v1046_v47 }
 0x313   : > { %v1055_v52 = vmul.f32 %v1044_v50, %v2384_v45 }
 0x314   : > { %v1048_v53 = vmul.f32 0.5, %v1047_v51 }
 0x315   : > { %1563 = vmatmul.msk.f32.vlgmr.msrb.gmra.mxu3 %vm766_vm2, %v1055_v52 }
 0x316   : > { %v1049_v54 = vsub.f32 1.5, %v1048_v53 }
 0x317   : > { %v1722_v55 = vpop.eup %1721 }
 0x318   : > { %v1050_v56 = vmul.f32 %v1720_v43, %v1049_v54  ;;  %v916_v58 = vmul.f32 %v1722_v55, %v904_v49  ;;  %vm922_vm3 = vweird.f32 %v1722_v55 }
 0x319   : > { %vm923_vm5 = vmor %vm921_vm4, %vm922_vm3 }
 0x31a   : > { %v917_v60 = vmul.f32 %v1722_v55, %v916_v58  ;;  %v1054_v61 = vsel %vm1053_vm1, %v1720_v43, %v1050_v56 }
 0x31b   : > { %v1056_v63 = vmul.f32 %v1054_v61, %v2389_v48 }
 0x31c   : > { %v918_v45 = vmul.f32 0.5, %v917_v60 }
 0x31d   : > { %1564 = vmatmul.msk.f32.gmra.mxu3 %vm766_vm2, %v1056_v63 }
 0x31e   : > { %v919_v1 = vsub.f32 1.5, %v918_v45 }
 0x320   : > { %v920_v3 = vmul.f32 %v1722_v55, %v919_v1 }
 0x322   : > { %v924_v6 = vsel %vm923_vm5, %v1722_v55, %v920_v3 }
 0x323   : > { %v926_v48 = vmul.f32 %v924_v6, %v2382_v44 }
 0x325   : > { %1560 = vmatmul.msk.f32.gmra.mxu1 %vm766_vm2, %v926_v48  ;;  %1570 = vmatmul.msk.f32.vlgmr.msra.gmra.mxu3 %vm1262_vm6, %v1253_v5 }
 0x32f   : > { %v1161_v8 = vpop.xlane.xlu1 %1160 }
 0x330   : > { %1723 = vrsqrt.f32 %v1161_v8  ;;  %vm1171_vm8 = vweird.f32 %v1161_v8 }
 0x336   : > { %v1724_v9 = vpop.eup %1723 }
 0x337   : > { %v1166_v10 = vmul.f32 %v1724_v9, %v1161_v8  ;;  %v1164_v11 = vpop.xlane.xlu2 %1163  ;;  %vm1172_vm7 = vweird.f32 %v1724_v9 }
 0x338   : > { %1725 = vrsqrt.f32 %v1164_v11  ;;  %vm1173_vm9 = vmor %vm1171_vm8, %vm1172_vm7  ;;  %vm1181_vm11 = vweird.f32 %v1164_v11 }
 0x339   : > { %v1167_v12 = vmul.f32 %v1724_v9, %v1166_v10 }
 0x33b   : > { %v1168_v13 = vmul.f32 0.5, %v1167_v12 }
 0x33d   : > { %v1169_v14 = vsub.f32 1.5, %v1168_v13 }
 0x33e   : > { %v1726_v15 = vpop.eup %1725 }
 0x33f   : > { %v1170_v16 = vmul.f32 %v1724_v9, %v1169_v14  ;;  %v1176_v17 = vmul.f32 %v1726_v15, %v1164_v11  ;;  %vm1182_vm10 = vweird.f32 %v1726_v15 }
 0x340   : > { %vm1183_vm12 = vmor %vm1181_vm11, %vm1182_vm10 }
 0x341   : > { %v1174_v44 = vsel %vm1173_vm9, %v1724_v9, %v1170_v16  ;;  %v1177_v18 = vmul.f32 %v1726_v15, %v1176_v17 }
 0x342   : > { %v1185_v19 = vmul.f32 %v1174_v44, %v2397_v57 }
 0x343   : > { %v1178_v20 = vmul.f32 0.5, %v1177_v18 }
 0x344   : > { %1567 = vmatmul.msk.f32.vlgmr.msra.gmra.mxu1 %vm766_vm2, %v1185_v19 }
 0x345   : > { %v1179_v21 = vsub.f32 1.5, %v1178_v20 }
 0x347   : > { %v1180_v22 = vmul.f32 %v1726_v15, %v1179_v21 }
 0x349   : > { %v1184_v23 = vsel %vm1183_vm12, %v1726_v15, %v1180_v22 }
 0x34a   : > { %v1186_v24 = vmul.f32 %v1184_v23, %v2402_v2 }
 0x34b   : > { %v820_v25 = vpop.f32.mrf.mxu3 }
 0x34c   : > { %1568 = vmatmul.msk.f32.gmra.mxu1 %vm766_vm2, %v1186_v24 }
 0x353   : > { %v823_v26 = vpop.f32.mrf.mxu3 }
 0x37c   : > { %v952_v29 = vpop.f32.mrf.mxu1 }
 0x398   : > { %v1082_v27 = vpop.f32.mrf.mxu3 }
 0x3a0   : > { %v1085_v28 = vpop.f32.mrf.mxu3 }
 0x3a2   : > { %v955_v57 = vpop.f32.mrf.mxu1 }
 0x3a8   : > { %v1283_v30 = vpop.f32.mrf.mxu3 }
 0x3a9   : > { %1727 = vrsqrt.f32 %v1283_v30  ;;  %vm1297_vm13 = vweird.f32 %v1283_v30 }
 0x3af   : > { %v1728_v31 = vpop.eup %1727 }
 0x3b0   : > { %v1292_v32 = vmul.f32 %v1728_v31, %v1283_v30  ;;  %vm1298_vm2 = vweird.f32 %v1728_v31 }
 0x3b1   : > { %vm1299_vm14 = vmor %vm1297_vm13, %vm1298_vm2 }
 0x3b2   : > { %v1293_v34 = vmul.f32 %v1728_v31, %v1292_v32 }
 0x3b4   : > { %v1294_v35 = vmul.f32 0.5, %v1293_v34 }
 0x3b6   : > { %v1295_v38 = vsub.f32 1.5, %v1294_v35 }
 0x3b8   : > { %v1296_v2 = vmul.f32 %v1728_v31, %v1295_v38 }
 0x3ba   : > { %v1300_v40 = vsel %vm1299_vm14, %v1728_v31, %v1296_v2 }
 0x3bb   : > { %v1301_v42 = vmul.f32 %v1300_v40, %v1290_v41 }
 0x3c1   : > { %v1212_v33 = vpop.f32.mrf.mxu1 }
 0x3c9   : > { %v1215_v37 = vpop.f32.mrf.mxu1 }
 0x3ca   : > { %1325 = vmatpush.msrb.mxu0 %v1215_v37 }
 0x3cc   : > { %1326 = vmatpush.msrb.mxu0 %v1212_v33 }
 0x3ce   : > { %1327 = vmatpush.msrb.mxu0 %v1085_v28 }
 0x3d0   : > { %1328 = vmatpush.msrb.mxu0 %v1082_v27 }
 0x3d2   : > { %1329 = vmatpush.msrb.mxu0 %v955_v57 }
 0x3d4   : > { %1330 = vmatpush.msrb.mxu0 %v952_v29 }
 0x3d6   : > { %1331 = vmatpush.msrb.mxu0 %v823_v26 }
 0x3d8   : > { %1332 = vmatpush.msrb.mxu0 %v820_v25 }
 0x3d9   : > { %1571 = vmatmul.msk.f32.vlgmr.msrb.gmra.mxu0 %vm1262_vm6, %v1301_v42 }
 0x456   : > { %v1334_v43 = vpop.f32.mrf.mxu0 }
 0x457   : > { %v1335_v46 = vadd.f32 %v1710_v36, %v1334_v43 }
 0x459   : > { %1337 = vst [vmem:[%s632_s30] sm:$0xff] %v1335_v46 }
 0x45a   : > { %1996 = shalt.err (!%p1993_p13)
}
 0x45b   : > { %1603 = dma.vmem_to_hbm [thread:$0]  (%p2237_p2), %s1353_s14, 128, %s1355_s18, %s1339_s20  }
 0x45c PF: > { %s2544_s16 = sld [smem:[#allocation24_spill]]  ;;  %p1632_p0 = pnand %p1534_p6, %p2244_p7 }
 0x45d   : > { %s2546_s15 = sld [smem:[#allocation27_spill]] }
 0x45e   : > { %p1633_p4 = pneg %p1632_p0 }
 0x462   : > { %s1366_s19 = sand.u32 1, %s2544_s16  }
 0x463   : > { %s1367_s21 = scalar_lea.sflag [#allocation5], %s1366_s19 }
 0x464   : > { %2042 = dma.done.wait (%p1633_p4), %s1367_s21, 128  }
 0x465   : > { %2044 = vsyncadd (%p1633_p4), %s1367_s21, 4294967168  ;;  %s35_s30 = sadd.s32 1, %s2546_s15   ;;  %s2547_s1 = sld [smem:[#allocation30_spill]] }
 0x466   : > { %p32_p9 = scmp.ge.s32.totalorder %s35_s30, 4   ;;  %s2548_s28 = sld [smem:[#allocation26_spill]] }
 0x467   : > { %s2549_s29 = sld [smem:[#allocation28_spill]]  ;;  %s2550_s25 = smov %s2051_s26 }
 0x468   : > { %s2551_s26 = smov %s2055_s27  ;;  %34 = sbr.rel (!%p32_p9) target bundleno = 21 (0x15), region = 165 }
 0x46b   : > { %s2552_s27 = smov %s2547_s1 }
 0x46d   :  { %1373 = vsyncpa [#allocation4], 1 }
 0x46e   :  { %1375 = vsyncpa [#allocation4 + $0x1], 1 }
 0x46f   :  { %1376 = vsyncpa [#allocation7], 1 }
 0x470   :  { %1378 = vsyncpa [#allocation7 + $0x1], 1 }
 0x471   :  { %1379 = vsyncpa [#allocation10], 1 }
 0x472   :  { %1380 = vsyncpa [#allocation13], 1 }
 0x473   :  { %1381 = vsyncpa [#allocation16], 1 }
 0x474   :  { %1382 = vsyncpa [#allocation5], 1 }
 0x475   :  { %1384 = vsyncpa [#allocation5 + $0x1], 1 }

</bundles_post_ra>
